<compile_context>
chip_gen: v6e
topology: v6e:2x2x1
jax: 0.10.0
libtpu: 0.0.40
codegen_flags: <defaults>
</compile_context>

<pallas_src>
import math

import jax
import jax.numpy as jnp
from jax.experimental import pallas as pl
from jax.experimental.pallas import tpu as pltpu

_LANES = 128            # lane width of a vreg
_MAX_BLOCK_ROWS = 1024  # 1024 x 128 f32 = 512 KiB per array per buffer


def _rel_root_depth_loss_kernel(pred_ref, gt_ref, valid_ref, loss_ref):
    # Elementwise: |pred - gt| * valid, all on the VPU. valid may arrive in a
    # narrow dtype (bool / int8) and is cast in-register (free; VALU has slack).
    pred = pred_ref[...]
    gt = gt_ref[...]
    valid = valid_ref[...].astype(loss_ref.dtype)
    loss_ref[...] = (jnp.abs(pred - gt) * valid).astype(loss_ref.dtype)


def _pick_block_rows(total_rows):
    """Block row count for an exact (no-padding) tiling, or None if impossible.

    A single full block may have any row count; a gridded block must be a
    multiple of 8 (sublanes) that divides total_rows.
    """
    if total_rows <= _MAX_BLOCK_ROWS:
        return total_rows
    for br in range(_MAX_BLOCK_ROWS, 0, -8):
        if total_rows % br == 0:
            return br
    return None


def rel_root_depth_loss(root_depth_out, root_depth_gt, root_valid):
    """loss = |root_depth_out - root_depth_gt| * root_valid (elementwise)."""
    assert root_depth_out.shape == root_depth_gt.shape == root_valid.shape
    orig_shape = root_depth_out.shape
    out_dtype = jnp.result_type(root_depth_out.dtype, root_depth_gt.dtype)

    n = math.prod(orig_shape) if orig_shape else 1
    if n == 0:
        return jnp.zeros(orig_shape, dtype=out_dtype)

    # Lane-dense layout: view the data as (total_rows, 128).
    block_rows = None
    if n % _LANES == 0:
        block_rows = _pick_block_rows(n // _LANES)

    if block_rows is not None:
        # Fast path: free reshape, no padding, no wrapper-side copy.
        total_rows = n // _LANES
        padded_n = n
    else:
        # Pad path: pad the flat array up to a whole number of blocks.
        rows_needed = -(-n // _LANES)
        if rows_needed >= _MAX_BLOCK_ROWS:
            block_rows = _MAX_BLOCK_ROWS
        else:
            block_rows = max(8, -(-rows_needed // 8) * 8)  # multiple of 8 sublanes
        total_rows = -(-rows_needed // block_rows) * block_rows
        padded_n = total_rows * _LANES

    num_blocks = total_rows // block_rows

    def _prep(x, dtype):
        flat = jnp.ravel(x).astype(dtype)
        if padded_n != n:
            flat = jnp.pad(flat, (0, padded_n - n))
        return flat.reshape(total_rows, _LANES)

    pred2d = _prep(root_depth_out, out_dtype)
    gt2d = _prep(root_depth_gt, out_dtype)
    # Keep valid's original (possibly narrow) dtype to minimize HBM bytes.
    valid2d = _prep(root_valid, root_valid.dtype)

    block = pl.BlockSpec((block_rows, _LANES), lambda i: (i, 0))

    loss2d = pl.pallas_call(
        _rel_root_depth_loss_kernel,
        out_shape=jax.ShapeDtypeStruct((total_rows, _LANES), out_dtype),
        grid=(num_blocks,),
        in_specs=[block, block, block],
        out_specs=block,
        compiler_params=pltpu.CompilerParams(
            dimension_semantics=("parallel",),
        ),
    )(pred2d, gt2d, valid2d)

    flat_out = loss2d.reshape(-1)
    if padded_n != n:
        flat_out = flat_out[:n]
    return flat_out.reshape(orig_shape)


if __name__ == "__main__":
    key = jax.random.PRNGKey(0)

    def _check(batch_shape, tag):
        k1, k2, k3 = jax.random.split(jax.random.fold_in(key, tag), 3)
        pred = jax.random.normal(k1, batch_shape, dtype=jnp.float32)
        gt = jax.random.normal(k2, batch_shape, dtype=jnp.float32)
        valid = (jax.random.uniform(k3, batch_shape) > 0.5).astype(jnp.float32)

        loss = rel_root_depth_loss(pred, gt, valid)
        jax.block_until_ready(loss)

        ref = jnp.abs(pred - gt) * valid
        assert loss.shape == ref.shape
        assert jnp.allclose(loss, ref, atol=1e-6), f"mismatch at {batch_shape}"

    # One relative root depth per sample: (B, 1), matching the module's usage.
    _check((8, 1), 0)
    # Odd, non-lane-aligned size to exercise the padding / lane-dense repack.
    _check((257, 1), 1)
    # Lane-aligned size to exercise the zero-copy fast path.
    _check((2, 256), 2)

    print("KERNEL_OK")
</pallas_src>

<mosaic_0001>
module attributes {stable_mosaic.version = 11 : i64} {
  func.func @_rel_root_depth_loss_kernel(%arg0: i32, %arg1: memref<8x128xf32, #tpu.memory_space<vmem>>, %arg2: memref<8x128xf32, #tpu.memory_space<vmem>>, %arg3: memref<8x128xf32, #tpu.memory_space<vmem>>, %arg4: memref<8x128xf32, #tpu.memory_space<vmem>>) attributes {dimension_semantics = [#tpu.dimension_semantics<parallel>], iteration_bounds = array<i64: 1>, scalar_prefetch = 0 : i64, scratch_operands = 0 : i64, tpu.core_type = #tpu.core_type<tc>, window_params = [{transform_indices = @transform_0, window_bounds = array<i64: 8, 128>}, {transform_indices = @transform_1, window_bounds = array<i64: 8, 128>}, {transform_indices = @transform_2, window_bounds = array<i64: 8, 128>}, {transform_indices = @transform_3, window_bounds = array<i64: 8, 128>}]} {
    %c0 = arith.constant 0 : index
    %c0_0 = arith.constant 0 : index
    %0 = vector.load %arg1[%c0, %c0_0] : memref<8x128xf32, #tpu.memory_space<vmem>>, vector<8x128xf32>
    %c0_1 = arith.constant 0 : index
    %c0_2 = arith.constant 0 : index
    %1 = vector.load %arg2[%c0_1, %c0_2] : memref<8x128xf32, #tpu.memory_space<vmem>>, vector<8x128xf32>
    %c0_3 = arith.constant 0 : index
    %c0_4 = arith.constant 0 : index
    %2 = vector.load %arg3[%c0_3, %c0_4] : memref<8x128xf32, #tpu.memory_space<vmem>>, vector<8x128xf32>
    %3 = arith.subf %0, %1 : vector<8x128xf32>
    %4 = math.absf %3 : vector<8x128xf32>
    %5 = arith.mulf %4, %2 : vector<8x128xf32>
    %c0_5 = arith.constant 0 : index
    %c0_6 = arith.constant 0 : index
    %6 = vector.load %arg4[%c0_5, %c0_6] : memref<8x128xf32, #tpu.memory_space<vmem>>, vector<8x128xf32>
    tpu.vector_store %arg4[%c0_5, %c0_6], %5 {strides = array<i32>} : memref<8x128xf32, #tpu.memory_space<vmem>>, vector<8x128xf32>,
    return
  }
  func.func @transform_0(%arg0: i32) -> (i32, i32) {
    %c0_i32 = arith.constant 0 : i32
    %c0_i32_0 = arith.constant 0 : i32
    return %arg0, %c0_i32 : i32, i32
  }
  func.func @transform_1(%arg0: i32) -> (i32, i32) {
    %c0_i32 = arith.constant 0 : i32
    %c0_i32_0 = arith.constant 0 : i32
    return %arg0, %c0_i32 : i32, i32
  }
  func.func @transform_2(%arg0: i32) -> (i32, i32) {
    %c0_i32 = arith.constant 0 : i32
    %c0_i32_0 = arith.constant 0 : i32
    return %arg0, %c0_i32 : i32, i32
  }
  func.func @transform_3(%arg0: i32) -> (i32, i32) {
    %c0_i32 = arith.constant 0 : i32
    %c0_i32_0 = arith.constant 0 : i32
    return %arg0, %c0_i32 : i32, i32
  }
}

</mosaic_0001>

<bundles_post_ra>
// kernel: tpu_custom_call.1
= control target key start
LH: loop header
LB: loop body
LE: loop exit
PB: predicated region body
PF: predicated region fallthrough
CT: control target
= control target key end

     0   :  { %8 = vsyncpa [#allocation3], 0  ;;  %s199_s0 = inlined_call_operand.hbm [shape: f32[8,128], index: 0, kind: input, shape index: {}]   ;;  %s200_s1 = inlined_call_operand.hbm [shape: f32[8,128], index: 1, kind: input, shape index: {}]   ;;  %s201_s2 = inlined_call_operand.hbm [shape: f32[8,128], index: 2, kind: input, shape index: {}]   ;;  %s202_s3 = inlined_call_operand.hbm [shape: f32[8,128], index: 3, kind: output, shape index: {}]  }
   0x1   :  { %9 = vsyncpa [#allocation6], 0 }
   0x2   :  { %10 = vsyncpa [#allocation4], 0  ;;  %s163_s12 = smov [#allocation5]   ;;  %s164_s14 = smov [#allocation2]  }
   0x3   :  { %s27_s13 = sshll.u32 %s163_s12, 4  ;;  %s17_s15 = sshll.u32 %s164_s14, 4  ;;  %s28_s13 = int_to_ptr.vmem [resolvable:$true] %s27_s13  ;;  %s18_s15 = int_to_ptr.vmem [resolvable:$true] %s17_s15 }
   0x4   :  { %s85_s16 = scalar_lea.vmem %s28_s13, 128  ;;  %p90_p1 = scmp.lt.s32.totalorder %s28_s13, %s28_s13 }
   0x5   :  { %p86_p0 = scmp.ne.s32.totalorder %s28_s13, %s85_s16  ;;  %p91_p2 = scmp.lt.s32.totalorder %s85_s16, %s85_s16 }
   0x7   :  { %p92_p3 = por %p91_p2, %p90_p1 }
   0x9   :  { %p93_p4 = pnand %p92_p3, %p86_p0 }
   0xb   :  { %96 = shalt.err (!%p93_p4)
}
   0xc   :  { %30 = dma.hbm_to_vmem [thread:$0]  %s200_s1, 128, %s28_s13, [#allocation6]  }
   0xd   :  { %s105_s19 = scalar_lea.vmem %s18_s15, 128  ;;  %p110_p6 = scmp.lt.s32.totalorder %s18_s15, %s18_s15 }
   0xe   :  { %p106_p5 = scmp.ne.s32.totalorder %s18_s15, %s105_s19  ;;  %p111_p7 = scmp.lt.s32.totalorder %s105_s19, %s105_s19 }
  0x10   :  { %p112_p8 = por %p111_p7, %p110_p6 }
  0x12   :  { %p113_p9 = pnand %p112_p8, %p106_p5 }
  0x14   :  { %116 = shalt.err (!%p113_p9)
}
  0x15   :  { %20 = dma.hbm_to_vmem [thread:$0]  %s199_s0, 128, %s18_s15, [#allocation3]  }
  0x16   :  { %s165_s22 = smov [#allocation7]  }
  0x17   :  { %s37_s23 = sshll.u32 %s165_s22, 4  ;;  %s38_s23 = int_to_ptr.vmem [resolvable:$true] %s37_s23 }
  0x18   :  { %s125_s24 = scalar_lea.vmem %s38_s23, 128  ;;  %p130_p11 = scmp.lt.s32.totalorder %s38_s23, %s38_s23 }
  0x19   :  { %p126_p10 = scmp.ne.s32.totalorder %s38_s23, %s125_s24  ;;  %p131_p12 = scmp.lt.s32.totalorder %s125_s24, %s125_s24 }
  0x1b   :  { %p132_p13 = por %p131_p12, %p130_p11 }
  0x1d   :  { %p133_p0 = pnand %p132_p13, %p126_p10 }
  0x1f   :  { %136 = shalt.err (!%p133_p0)
}
  0x20   :  { %40 = dma.hbm_to_vmem [thread:$0]  %s201_s2, 128, %s38_s23, [#allocation6]  }
  0x21   :  { %157 = dma.done.wait [#allocation3], 128  }
  0x22   :  { %158 = vsyncadd [#allocation3], 4294967168 }
  0x23   :  { %159 = dma.done.wait [#allocation6], 256  }
  0x24   :  { %160 = vsyncadd [#allocation6], 4294967040  ;;  %v50_v0 = vld [vmem:[#allocation2] sm:$0xff]  ;;  %v51_v1 = vld [vmem:[#allocation5] sm:$0xff]  ;;  %s166_s0 = smov [#allocation8]  }
  0x25   :  { %v53_v2 = vsub.f32 %v50_v0, %v51_v1  ;;  %v52_v3 = vld [vmem:[#allocation7] sm:$0xff]  ;;  %s63_s26 = sshll.u32 %s166_s0, 4  ;;  %s64_s26 = int_to_ptr.vmem [resolvable:$true] %s63_s26 }
  0x26   :  { %s137_s27 = scalar_lea.vmem %s64_s26, 128  ;;  %p142_p2 = scmp.lt.s32.totalorder %s64_s26, %s64_s26 }
  0x27   :  { %v54_v4 = vand.u32 2147483647, %v53_v2  ;;  %p138_p1 = scmp.ne.s32.totalorder %s64_s26, %s137_s27  ;;  %p143_p3 = scmp.lt.s32.totalorder %s137_s27, %s137_s27 }
  0x29   :  { %v55_v5 = vmul.f32 %v54_v4, %v52_v3  ;;  %p144_p4 = por %p143_p3, %p142_p2 }
  0x2b   :  { %56 = vst [vmem:[#allocation8] sm:$0xff] %v55_v5  ;;  %p145_p5 = pnand %p144_p4, %p138_p1 }
  0x2d   :  { %148 = shalt.err (!%p145_p5)
}
  0x2e   :  { %66 = dma.vmem_to_hbm [thread:$0]  %s64_s26, 128, %s202_s3, [#allocation4]  }
  0x2f   :  { %161 = dma.done.wait [#allocation4], 128  }
  0x30   :  { %162 = vsyncadd [#allocation4], 4294967168 }
  0x31   :  { %70 = vsyncpa [#allocation3], 1 }
  0x32   :  { %71 = vsyncpa [#allocation6], 1 }
  0x33   :  { %72 = vsyncpa [#allocation4], 1 }

</bundles_post_ra>
